<compile_context>
chip_gen: v7x
topology: tpu7x:2x2x1
jax: 0.10.0
libtpu: 0.0.40
codegen_flags: <defaults>
</compile_context>

<pallas_src>
import functools

import jax
import jax.numpy as jnp
from jax.experimental import pallas as pl
from jax.experimental.pallas import tpu as pltpu


# ----------------------------- Pallas kernel -------------------------------

def lightgcn_kernel(a_ref, b_ref, x0_ref, out_ref, *, num_layers):
    """a: [N,N] bf16, b/x0: [N,Dp] f32 -> out: [N,Dp] f32."""
    a = a_ref[...]                                            # hoisted once (bf16)
    b = b_ref[...]                                            # constant bias (f32)
    x0 = x0_ref[...]
    h = x0
    acc = x0                                                  # unscaled sum: x0 + sum_l H_l
    for _ in range(num_layers):                               # small static L -> unrolled
        # H_{l+1} = A @ H_l + B   (bf16 MXU contraction, f32 accumulation, f32 bias add)
        h = jnp.dot(a, h.astype(jnp.bfloat16),
                    preferred_element_type=jnp.float32) + b
        acc = acc + h
    out_ref[...] = acc * jnp.float32(1.0 / (num_layers + 1))  # single scale at the end


def lightgcn_forward_pallas(a_bf16, b_pad, x0_pad, num_layers):
    n, dp = x0_pad.shape
    # Working set (bytes): bf16 operator + f32 B/x0/out, 4x headroom for double
    # buffers / compiler scratch, clamped well below v7x's 64 MiB physical VMEM.
    work = a_bf16.size * 2 + (b_pad.size + x0_pad.size + n * dp) * 4
    vmem_bytes = int(min(48 << 20, max(4 << 20, 4 * work)))
    return pl.pallas_call(
        functools.partial(lightgcn_kernel, num_layers=num_layers),
        out_shape=jax.ShapeDtypeStruct((n, dp), jnp.float32),
        grid=(),
        in_specs=[
            pl.BlockSpec((n, n), lambda: (0, 0)),
            pl.BlockSpec((n, dp), lambda: (0, 0)),
            pl.BlockSpec((n, dp), lambda: (0, 0)),
        ],
        out_specs=pl.BlockSpec((n, dp), lambda: (0, 0)),
        compiler_params=pltpu.CompilerParams(vmem_limit_bytes=vmem_bytes),
    )(a_bf16, b_pad, x0_pad)


# ----------------------- jitted full forward (build + kernel) ---------------

@functools.partial(jax.jit, static_argnames=("num_layers",))
def enhanced_lightgcn_forward(embeddings, edge_type_emb, edge_index, edge_weight,
                              edge_type, num_layers):
    N, D = embeddings.shape
    Dp = ((D + 127) // 128) * 128                             # lane-dense padded width
    row, col = edge_index[0], edge_index[1]
    E = row.shape[0]

    # degree(row, N): count of each node among sources (matches torch_geometric.degree)
    deg = jnp.zeros((N,), jnp.float32).at[row].add(1.0)
    dsi = jnp.where(deg > 0, jax.lax.rsqrt(deg), 0.0)

    w = (edge_weight.astype(jnp.float32) if edge_weight is not None
         else jnp.ones((E,), jnp.float32))
    coeff = w * dsi[row] * dsi[col]                           # [E]

    # Dense propagation operator: A[dst, src] += coeff  (H_next = A @ H)
    A = jnp.zeros((N, N), jnp.float32).at[col, row].add(coeff).astype(jnp.bfloat16)

    # Constant per-destination bias: B[dst] += 0.1 * edge_type_emb[type] * coeff
    if edge_type is not None:
        B = jnp.zeros((N, D), jnp.float32).at[col].add(
            (edge_type_emb[edge_type] * 0.1) * coeff[:, None])
    else:
        B = jnp.zeros((N, D), jnp.float32)

    pad = Dp - D
    x0_pad = jnp.pad(embeddings.astype(jnp.float32), ((0, 0), (0, pad)))
    B_pad = jnp.pad(B, ((0, 0), (0, pad)))

    out_pad = lightgcn_forward_pallas(A, B_pad, x0_pad, num_layers)
    return out_pad[:, :D]


# --------------------------- model (JAX wrapper) ---------------------------

class EnhancedLightGCNPallas:
    def __init__(self, num_users, num_items, embed_dim=64, num_layers=3,
                 num_edge_types=3, key=None):
        self.num_users = num_users
        self.num_items = num_items
        self.num_nodes = num_users + num_items
        self.embed_dim = embed_dim
        self.num_layers = num_layers
        self.num_edge_types = num_edge_types
        if key is None:
            key = jax.random.PRNGKey(0)
        k1, k2 = jax.random.split(key)
        # xavier_uniform on an Embedding weight [num_emb, dim]:
        # bound = sqrt(6 / (num_emb + dim))
        b1 = (6.0 / (self.num_nodes + embed_dim)) ** 0.5
        b2 = (6.0 / (num_edge_types + embed_dim)) ** 0.5
        self.embeddings = jax.random.uniform(
            k1, (self.num_nodes, embed_dim), jnp.float32, -b1, b1)
        self.edge_type_emb = jax.random.uniform(
            k2, (num_edge_types, embed_dim), jnp.float32, -b2, b2)

    def forward(self, edge_index, edge_weight=None, edge_type=None):
        return enhanced_lightgcn_forward(
            self.embeddings, self.edge_type_emb, edge_index, edge_weight,
            edge_type, num_layers=self.num_layers)

    # Pure-JAX f32 reference mirroring the PyTorch gather/scatter code path.
    def forward_reference(self, edge_index, edge_weight=None, edge_type=None):
        x0 = self.embeddings
        N = x0.shape[0]
        row, col = edge_index[0], edge_index[1]
        deg = jnp.zeros((N,), jnp.float32).at[row].add(1.0)
        deg_sqrt_inv = jnp.where(deg > 0, deg ** -0.5, 0.0)
        H = x0
        out = x0 / (self.num_layers + 1)
        for _ in range(self.num_layers):
            msg = H[row]
            if edge_type is not None:
                msg = msg + self.edge_type_emb[edge_type] * 0.1
            if edge_weight is not None:
                msg = msg * edge_weight[:, None]
            norm = deg_sqrt_inv[row] * deg_sqrt_inv[col]
            msg = msg * norm[:, None]
            H = jnp.zeros_like(x0).at[col].add(msg)
            out = out + H / (self.num_layers + 1)
        return out

    # TODO(synk): recommend() (user x item matmul + top_k) is outside the forward-pass
    # spec; it is a plain jnp.dot + jax.lax.top_k on the kernel's output.


# --------------------------------- main ------------------------------------

if __name__ == "__main__":
    num_users, num_items = 48, 80          # num_nodes = 128
    embed_dim, num_layers, num_edge_types = 64, 3, 3
    num_pairs = 512

    key = jax.random.PRNGKey(0)
    k_model, k_u, k_i, k_w, k_t = jax.random.split(key, 5)

    model = EnhancedLightGCNPallas(num_users, num_items, embed_dim,
                                   num_layers, num_edge_types, key=k_model)

    N = num_users + num_items
    # Bidirectional user<->item edges so source degrees (and hence norms) are nonzero
    # in both directions — exercises the full message-passing path.
    u = jax.random.randint(k_u, (num_pairs,), 0, num_users, jnp.int32)
    it = jax.random.randint(k_i, (num_pairs,), num_users, N, jnp.int32)
    src = jnp.concatenate([u, it])
    dst = jnp.concatenate([it, u])
    edge_index = jnp.stack([src, dst], axis=0)                 # [2, 2*num_pairs]
    num_edges = edge_index.shape[1]
    edge_weight = jax.random.uniform(k_w, (num_edges,), jnp.float32, 0.1, 1.0)
    edge_type = jax.random.randint(k_t, (num_edges,), 0, num_edge_types, jnp.int32)

    out = model.forward(edge_index, edge_weight, edge_type)
    out = jax.block_until_ready(out)

    ref = jax.block_until_ready(
        model.forward_reference(edge_index, edge_weight, edge_type))
    assert out.shape == (N, embed_dim)
    # bf16 operator in the kernel -> slightly looser tolerance than a pure-f32 path.
    assert jnp.allclose(out, ref, atol=1e-2, rtol=1e-2), (
        "mismatch vs reference, max abs err = %e" % float(jnp.max(jnp.abs(out - ref))))

    print("KERNEL_OK")
</pallas_src>

<mosaic_0001>
module attributes {stable_mosaic.version = 11 : i64} {
  func.func private @main(%arg0: i32) attributes {dimension_semantics = [#tpu.dimension_semantics<core_parallel>], iteration_bounds = array<i64: 2>, tpu.core_type = #tpu.core_type<sc_scalar_subcore>, window_params = []} {
    return
  }
}

module attributes {stable_mosaic.version = 11 : i64} {
  func.func private @main(%arg0: i32) attributes {dimension_semantics = [#tpu.dimension_semantics<core_parallel>], iteration_bounds = array<i64: 2>, tpu.core_type = #tpu.core_type<sc_scalar_subcore>, window_params = []} {
    return
  }
}

module attributes {stable_mosaic.version = 11 : i64} {
  func.func @lightgcn_kernel(%arg0: memref<128x128xbf16, #tpu.memory_space<vmem>>, %arg1: memref<128x128xf32, #tpu.memory_space<vmem>>, %arg2: memref<128x128xf32, #tpu.memory_space<vmem>>, %arg3: memref<128x128xf32, #tpu.memory_space<vmem>>) attributes {dimension_semantics = [], scalar_prefetch = 0 : i64, scratch_operands = 0 : i64, tpu.core_type = #tpu.core_type<tc>} {
    %c0 = arith.constant 0 : index
    %c0_0 = arith.constant 0 : index
    %0 = vector.load %arg0[%c0, %c0_0] : memref<128x128xbf16, #tpu.memory_space<vmem>>, vector<128x128xbf16>
    %c0_1 = arith.constant 0 : index
    %c0_2 = arith.constant 0 : index
    %1 = vector.load %arg1[%c0_1, %c0_2] : memref<128x128xf32, #tpu.memory_space<vmem>>, vector<128x128xf32>
    %c0_3 = arith.constant 0 : index
    %c0_4 = arith.constant 0 : index
    %2 = vector.load %arg2[%c0_3, %c0_4] : memref<128x128xf32, #tpu.memory_space<vmem>>, vector<128x128xf32>
    %3 = arith.truncf %2 : vector<128x128xf32> to vector<128x128xbf16>
    %cst = arith.constant dense<0.000000e+00> : vector<128x128xf32>
    %4 = tpu.matmul %0, %3, %cst {dimension_numbers = #tpu.dot_dimension_numbers<[1], [0], [0], [1], [0, 0, 1, 1], [], []>} : vector<128x128xbf16>, vector<128x128xbf16>, vector<128x128xf32> -> vector<128x128xf32>
    %5 = arith.addf %4, %1 : vector<128x128xf32>
    %6 = arith.addf %2, %5 : vector<128x128xf32>
    %7 = arith.truncf %5 : vector<128x128xf32> to vector<128x128xbf16>
    %cst_5 = arith.constant dense<0.000000e+00> : vector<128x128xf32>
    %8 = tpu.matmul %0, %7, %cst_5 {dimension_numbers = #tpu.dot_dimension_numbers<[1], [0], [0], [1], [0, 0, 1, 1], [], []>} : vector<128x128xbf16>, vector<128x128xbf16>, vector<128x128xf32> -> vector<128x128xf32>
    %9 = arith.addf %8, %1 : vector<128x128xf32>
    %10 = arith.addf %6, %9 : vector<128x128xf32>
    %11 = arith.truncf %9 : vector<128x128xf32> to vector<128x128xbf16>
    %cst_6 = arith.constant dense<0.000000e+00> : vector<128x128xf32>
    %12 = tpu.matmul %0, %11, %cst_6 {dimension_numbers = #tpu.dot_dimension_numbers<[1], [0], [0], [1], [0, 0, 1, 1], [], []>} : vector<128x128xbf16>, vector<128x128xbf16>, vector<128x128xf32> -> vector<128x128xf32>
    %13 = arith.addf %12, %1 : vector<128x128xf32>
    %14 = arith.addf %10, %13 : vector<128x128xf32>
    %cst_7 = arith.constant 2.500000e-01 : f32
    %15 = vector.broadcast %cst_7 : f32 to vector<128x128xf32>
    %16 = arith.mulf %14, %15 : vector<128x128xf32>
    %c0_8 = arith.constant 0 : index
    %c0_9 = arith.constant 0 : index
    %17 = vector.load %arg3[%c0_8, %c0_9] : memref<128x128xf32, #tpu.memory_space<vmem>>, vector<128x128xf32>
    tpu.vector_store %arg3[%c0_8, %c0_9], %16 {strides = array<i32>} : memref<128x128xf32, #tpu.memory_space<vmem>>, vector<128x128xf32>,
    return
  }
}

</mosaic_0001>

<bundles_post_ra>
// kernel: enhanced_lightgcn_forward.1
= control target key start
LH: loop header
LB: loop body
LE: loop exit
PB: predicated region body
PF: predicated region fallthrough
CT: control target
= control target key end

     0   :  { %s1165_s2 = inlined_call_operand.vmem [shape: f32[128,128], index: 2, kind: input, shape index: {}]   ;;  %s1166_s0 = inlined_call_operand.vmem [shape: bf16[128,128], index: 0, kind: input, shape index: {}]   ;;  %s1167_s1 = inlined_call_operand.vmem [shape: f32[128,128], index: 1, kind: input, shape index: {}]   ;;  %s1168_s3 = inlined_call_operand.vmem [shape: f32[128,128], index: 3, kind: output, shape index: {}]  }
   0x1   :  { %v709_v0 = vld [vmem:[%s1165_s2] sm:$0xff]  ;;  %v714_v1 = vld [vmem:[%s1165_s2 + $0x8] sm:$0xff]  ;;  %v719_v2 = vld [vmem:[%s1165_s2 + $0x10] sm:$0xff] }
   0x2   :  { %v63_v3 = vpack.c.bf16 %v714_v1, %v709_v0  ;;  %v726_v4 = vld [vmem:[%s1165_s2 + $0x18] sm:$0xff]  ;;  %v733_v6 = vld [vmem:[%s1165_s2 + $0x20] sm:$0xff]  ;;  %v738_v7 = vld [vmem:[%s1165_s2 + $0x28] sm:$0xff] }
   0x3   :  { %v64_v5 = vpack.c.bf16 %v726_v4, %v719_v2  ;;  %v743_v8 = vld [vmem:[%s1165_s2 + $0x30] sm:$0xff]  ;;  %v65_v9 = vpack.c.bf16 %v738_v7, %v733_v6  ;;  %v750_v10 = vld [vmem:[%s1165_s2 + $0x38] sm:$0xff]  ;;  %v678_v11 = vld [vmem:[%s1166_s0] sm:$0xff]  }
   0x4   :  { %566 = vmatprep.subr.bf16.mxu0 %v63_v3  ;;  %582 = vmatprep.mubr.bf16.mxu0 %v678_v11  ;;  %v66_v12 = vpack.c.bf16 %v750_v10, %v743_v8  ;;  %v760_v13 = vld [vmem:[%s1165_s2 + $0x40] sm:$0xff]  ;;  %v765_v14 = vld [vmem:[%s1165_s2 + $0x48] sm:$0xff]  ;;  %v772_v16 = vld [vmem:[%s1165_s2 + $0x50] sm:$0xff] }
   0x5   :  { %567 = vmatpush3.bf16.msra.mxu0 %v63_v3  ;;  %614 = vmatprep.mubr.bf16.mxu1 %v678_v11  ;;  %v67_v15 = vpack.c.bf16 %v765_v14, %v760_v13  ;;  %v777_v17 = vld [vmem:[%s1165_s2 + $0x58] sm:$0xff]  ;;  %v784_v19 = vld [vmem:[%s1165_s2 + $0x60] sm:$0xff]  ;;  %v789_v20 = vld [vmem:[%s1165_s2 + $0x68] sm:$0xff] }
   0x6   :  { %568 = vmatprep.subr.bf16.mxu0 %v64_v5  ;;  %v68_v18 = vpack.c.bf16 %v777_v17, %v772_v16  ;;  %v69_v21 = vpack.c.bf16 %v789_v20, %v784_v19  ;;  %v796_v22 = vld [vmem:[%s1165_s2 + $0x70] sm:$0xff]  ;;  %v801_v23 = vld [vmem:[%s1165_s2 + $0x78] sm:$0xff]  ;;  %v808_v25 = vld [vmem:[%s1166_s0 + $0x8] sm:$0xff]  }
   0x7   :  { %v70_v24 = vpack.c.bf16 %v801_v23, %v796_v22  ;;  %v813_v26 = vld [vmem:[%s1166_s0 + $0x10] sm:$0xff]   ;;  %v820_v27 = vld [vmem:[%s1166_s0 + $0x18] sm:$0xff]   ;;  %v825_v28 = vld [vmem:[%s1166_s0 + $0x20] sm:$0xff]  }
   0x8   :  { %v832_v29 = vld [vmem:[%s1166_s0 + $0x28] sm:$0xff]   ;;  %v837_v30 = vld [vmem:[%s1166_s0 + $0x30] sm:$0xff]   ;;  %v844_v31 = vld [vmem:[%s1166_s0 + $0x38] sm:$0xff]  }
   0x9   :  { %569 = vmatpush3.bf16.msra.mxu0 %v64_v5  ;;  %1172 = vst [vmem:[#allocation2_spill] sm:$0xff] %v844_v31  ;;  %v850_v32 = vld [vmem:[%s1167_s1 + $0x10] sm:$0xff]  ;;  %v855_v34 = vld [vmem:[%s1167_s1 + $0x18] sm:$0xff]  ;;  %v860_v36 = vld [vmem:[%s1167_s1] sm:$0xff] }
   0xa   :  { %570 = vmatprep.subr.bf16.mxu0 %v65_v9  ;;  %1173 = vst [vmem:[#allocation3_spill] sm:$0xff] %v850_v32  ;;  %1174 = vst [vmem:[#allocation4_spill] sm:$0xff] %v860_v36  ;;  %v865_v37 = vld [vmem:[%s1167_s1 + $0x8] sm:$0xff]  ;;  %v886_v46 = vld [vmem:[%s1167_s1 + $0x30] sm:$0xff] }
   0xb   :  { %v891_v48 = vld [vmem:[%s1167_s1 + $0x38] sm:$0xff]  ;;  %v896_v50 = vld [vmem:[%s1167_s1 + $0x20] sm:$0xff]  ;;  %v901_v51 = vld [vmem:[%s1167_s1 + $0x28] sm:$0xff] }
   0xc   :  { %v922_v60 = vld [vmem:[%s1167_s1 + $0x50] sm:$0xff]  ;;  %v927_v62 = vld [vmem:[%s1167_s1 + $0x58] sm:$0xff]  ;;  %v932_v3 = vld [vmem:[%s1167_s1 + $0x40] sm:$0xff] }
   0xd   :  { %571 = vmatpush3.bf16.msra.mxu0 %v65_v9  ;;  %v937_v5 = vld [vmem:[%s1167_s1 + $0x48] sm:$0xff] }
   0xe   :  { %572 = vmatprep.subr.bf16.mxu0 %v66_v12 }
  0x11   :  { %573 = vmatpush3.bf16.msra.mxu0 %v66_v12 }
  0x12   :  { %574 = vmatprep.subr.bf16.mxu0 %v67_v15 }
  0x15   :  { %575 = vmatpush3.bf16.msra.mxu0 %v67_v15 }
  0x16   :  { %576 = vmatprep.subr.bf16.mxu0 %v68_v18 }
  0x19   :  { %577 = vmatpush3.bf16.msra.mxu0 %v68_v18 }
  0x1a   :  { %578 = vmatprep.subr.bf16.mxu0 %v69_v21 }
  0x1d   :  { %579 = vmatpush3.bf16.msra.mxu0 %v69_v21 }
  0x1e   :  { %580 = vmatprep.subr.bf16.mxu0 %v70_v24 }
  0x21   :  { %581 = vmatpush3.bf16.msra.mxu0 %v70_v24 }
  0x24   :  { %583 = vmatmul.mubr.bf16.vlgmr.msra.gmra.mrb[0].mxu0 %v808_v25 }
  0x25   :  { %586 = vmatprep.mubr.bf16.mxu0 %v813_v26 }
  0x2c   :  { %587 = vmatmul.mubr.bf16.gmra.mrb[4].mxu0 %v820_v27 }
  0x2d   :  { %590 = vmatprep.mubr.bf16.mxu0 %v825_v28 }
  0x34   :  { %591 = vmatmul.mubr.bf16.gmra.mrb[8].mxu0 %v832_v29 }
  0x35   :  { %594 = vmatprep.mubr.bf16.mxu0 %v837_v30 }
  0x3c   :  { %595 = vmatmul.mubr.bf16.gmra.mrb[12].mxu0 %v844_v31 }
  0x3d   :  { %646 = vmatprep.mubr.bf16.mxu0 %v678_v11 }
  0xf7   :  { %v584_v33 = vpop.f32.mrb[0].mxu0 }
  0xf8   :  { %v153_v35 = vpop.f32.mrb[1].mxu0  ;;  %v868_v39 = vadd.f32 %v584_v33, %v850_v32 }
  0xf9   :  { %v585_v38 = vpop.f32.mrb[2].mxu0  ;;  %v874_v42 = vadd.f32 %v153_v35, %v860_v36  ;;  %v958_v35 = vld [vmem:[%s1167_s1 + $0x70] sm:$0xff] }
  0xfa   :  { %v871_v40 = vadd.f32 %v585_v38, %v855_v34  ;;  %v156_v41 = vpop.f32.mrb[3].mxu0 }
  0xfb   :  { %v877_v43 = vadd.f32 %v156_v41, %v865_v37  ;;  %v963_v41 = vld [vmem:[%s1167_s1 + $0x78] sm:$0xff] }
  0xfc   :  { %v233_v44 = vpack.c.bf16 %v871_v40, %v868_v39 }
  0xfd   :  { %v232_v45 = vpack.c.bf16 %v877_v43, %v874_v42 }
  0xff   :  { %v588_v47 = vpop.f32.mrb[4].mxu0  ;;  %598 = vmatprep.subr.bf16.mxu1 %v232_v45 }
 0x100   :  { %v169_v49 = vpop.f32.mrb[5].mxu0  ;;  %599 = vmatpush3.bf16.msra.mxu1 %v232_v45  ;;  %v904_v53 = vadd.f32 %v588_v47, %v886_v46  ;;  %v968_v45 = vld [vmem:[%s1167_s1 + $0x60] sm:$0xff]  ;;  %v973_v47 = vld [vmem:[%s1167_s1 + $0x68] sm:$0xff] }
 0x101   :  { %v589_v52 = vpop.f32.mrb[6].mxu0  ;;  %600 = vmatprep.subr.bf16.mxu1 %v233_v44  ;;  %v910_v56 = vadd.f32 %v169_v49, %v896_v50 }
 0x102   :  { %v907_v54 = vadd.f32 %v589_v52, %v891_v48  ;;  %v172_v55 = vpop.f32.mrb[7].mxu0 }
 0x103   :  { %v913_v57 = vadd.f32 %v172_v55, %v901_v51 }
 0x104   :  { %v235_v58 = vpack.c.bf16 %v907_v54, %v904_v53  ;;  %601 = vmatpush3.bf16.msra.mxu1 %v233_v44 }
 0x105   :  { %v234_v59 = vpack.c.bf16 %v913_v57, %v910_v56 }
 0x107   :  { %v592_v61 = vpop.f32.mrb[8].mxu0  ;;  %602 = vmatprep.subr.bf16.mxu1 %v234_v59 }
 0x108   :  { %v185_v63 = vpop.f32.mrb[9].mxu0  ;;  %603 = vmatpush3.bf16.msra.mxu1 %v234_v59  ;;  %v940_v11 = vadd.f32 %v592_v61, %v922_v60 }
 0x109   :  { %v593_v9 = vpop.f32.mrb[10].mxu0  ;;  %604 = vmatprep.subr.bf16.mxu1 %v235_v58  ;;  %v946_v18 = vadd.f32 %v185_v63, %v932_v3 }
 0x10a   :  { %v943_v12 = vadd.f32 %v593_v9, %v927_v62  ;;  %v188_v15 = vpop.f32.mrb[11].mxu0 }
 0x10b   :  { %v949_v21 = vadd.f32 %v188_v15, %v937_v5 }
 0x10c   :  { %v237_v24 = vpack.c.bf16 %v943_v12, %v940_v11  ;;  %605 = vmatpush3.bf16.msra.mxu1 %v235_v58 }
 0x10d   :  { %v236_v33 = vpack.c.bf16 %v949_v21, %v946_v18 }
 0x10f   :  { %v596_v38 = vpop.f32.mrb[12].mxu0  ;;  %606 = vmatprep.subr.bf16.mxu1 %v236_v33 }
 0x110   :  { %v201_v44 = vpop.f32.mrb[13].mxu0  ;;  %607 = vmatpush3.bf16.msra.mxu1 %v236_v33  ;;  %v976_v52 = vadd.f32 %v596_v38, %v958_v35 }
 0x111   :  { %v597_v49 = vpop.f32.mrb[14].mxu0  ;;  %608 = vmatprep.subr.bf16.mxu1 %v237_v24  ;;  %v982_v59 = vadd.f32 %v201_v44, %v968_v45  ;;  %v216_v44 = vadd.f32 %v874_v42, %v709_v0 }
 0x112   :  { %v979_v55 = vadd.f32 %v597_v49, %v963_v41  ;;  %v204_v58 = vpop.f32.mrb[15].mxu0 }
 0x113   :  { %v985_v61 = vadd.f32 %v204_v58, %v973_v47 }
 0x114   :  { %v239_v63 = vpack.c.bf16 %v979_v55, %v976_v52  ;;  %609 = vmatpush3.bf16.msra.mxu1 %v237_v24  ;;  %v218_v24 = vadd.f32 %v868_v39, %v719_v2  ;;  %v217_v2 = vadd.f32 %v877_v43, %v714_v1  ;;  %v220_v1 = vadd.f32 %v910_v56, %v733_v6 }
 0x115   :  { %v238_v9 = vpack.c.bf16 %v985_v61, %v982_v59 }
 0x117   :  { %610 = vmatprep.subr.bf16.mxu1 %v238_v9 }
 0x118   :  { %611 = vmatpush3.bf16.msra.mxu1 %v238_v9 }
 0x119   :  { %612 = vmatprep.subr.bf16.mxu1 %v239_v63 }
 0x11c   :  { %613 = vmatpush3.bf16.msra.mxu1 %v239_v63  ;;  %v219_v63 = vadd.f32 %v871_v40, %v726_v4  ;;  %v222_v4 = vadd.f32 %v904_v53, %v743_v8 }
 0x11f   :  { %615 = vmatmul.mubr.bf16.vlgmr.msra.gmra.mrb[0].mxu1 %v808_v25 }
 0x120   :  { %618 = vmatprep.mubr.bf16.mxu1 %v813_v26 }
 0x127   :  { %619 = vmatmul.mubr.bf16.gmra.mrb[4].mxu1 %v820_v27 }
 0x128   :  { %622 = vmatprep.mubr.bf16.mxu1 %v825_v28 }
 0x12f   :  { %623 = vmatmul.mubr.bf16.gmra.mrb[8].mxu1 %v832_v29 }
 0x130   :  { %626 = vmatprep.mubr.bf16.mxu1 %v837_v30 }
 0x137   :  { %627 = vmatmul.mubr.bf16.gmra.mrb[12].mxu1 %v844_v31 }
 0x138   :  { %654 = vmatprep.mubr.bf16.mxu1 %v825_v28 }
 0x1f2   :  { %v616_v15 = vpop.f32.mrb[0].mxu1 }
 0x1f3   :  { %v283_v33 = vadd.f32 %v616_v15, %v850_v32  ;;  %v274_v38 = vpop.f32.mrb[1].mxu1 }
 0x1f4   :  { %v275_v49 = vadd.f32 %v274_v38, %v860_v36  ;;  %v617_v58 = vpop.f32.mrb[2].mxu1 }
 0x1f5   :  { %v1007_v9 = vadd.f32 %v283_v33, %v218_v24  ;;  %v286_v28 = vadd.f32 %v617_v58, %v855_v34  ;;  %v277_v31 = vpop.f32.mrb[3].mxu1 }
 0x1f6   :  { %v1012_v39 = vadd.f32 %v275_v49, %v216_v44  ;;  %v278_v15 = vadd.f32 %v277_v31, %v865_v37 }
 0x1f7   :  { %v1015_v32 = vadd.f32 %v286_v28, %v219_v63  ;;  %v354_v0 = vpack.c.bf16 %v286_v28, %v283_v33  ;;  %v223_v33 = vadd.f32 %v907_v54, %v750_v10  ;;  %v226_v28 = vadd.f32 %v940_v11, %v772_v16 }
 0x1f8   :  { %v1017_v42 = vadd.f32 %v278_v15, %v217_v2  ;;  %v353_v38 = vpack.c.bf16 %v278_v15, %v275_v49  ;;  %v224_v2 = vadd.f32 %v946_v18, %v760_v13 }
 0x1fa   :  { %v620_v36 = vpop.f32.mrb[4].mxu1  ;;  %630 = vmatprep.subr.bf16.mxu0 %v353_v38  ;;  %662 = vmatprep.subr.bf16.mxu1 %v353_v38 }
 0x1fb   :  { %v299_v40 = vadd.f32 %v620_v36, %v886_v46  ;;  %v290_v24 = vpop.f32.mrb[5].mxu1  ;;  %631 = vmatpush3.bf16.msra.mxu0 %v353_v38  ;;  %670 = vmatpush3.bf16.msra.mxu1 %v353_v38  ;;  %v221_v36 = vadd.f32 %v913_v57, %v738_v7  ;;  %v227_v38 = vadd.f32 %v943_v12, %v777_v17 }
 0x1fc   :  { %v291_v31 = vadd.f32 %v290_v24, %v896_v50  ;;  %v621_v43 = vpop.f32.mrb[6].mxu1  ;;  %632 = vmatprep.subr.bf16.mxu0 %v354_v0  ;;  %663 = vmatprep.subr.bf16.mxu1 %v354_v0 }
 0x1fd   :  { %v1027_v44 = vadd.f32 %v299_v40, %v222_v4  ;;  %v302_v8 = vadd.f32 %v621_v43, %v891_v48  ;;  %v293_v53 = vpop.f32.mrb[7].mxu1  ;;  %v230_v43 = vadd.f32 %v976_v52, %v796_v22 }
 0x1fe   :  { %v1032_v49 = vadd.f32 %v291_v31, %v220_v1  ;;  %v294_v6 = vadd.f32 %v293_v53, %v901_v51 }
 0x1ff   :  { %v1035_v56 = vadd.f32 %v302_v8, %v223_v33  ;;  %v356_v58 = vpack.c.bf16 %v302_v8, %v299_v40  ;;  %633 = vmatpush3.bf16.msra.mxu0 %v354_v0  ;;  %671 = vmatpush3.bf16.msra.mxu1 %v354_v0  ;;  %v225_v40 = vadd.f32 %v949_v21, %v765_v14 }
 0x200   :  { %v1037_v63 = vadd.f32 %v294_v6, %v221_v36  ;;  %v355_v10 = vpack.c.bf16 %v294_v6, %v291_v31  ;;  %v228_v33 = vadd.f32 %v982_v59, %v784_v19  ;;  %v231_v36 = vadd.f32 %v979_v55, %v801_v23 }
 0x202   :  { %v624_v54 = vpop.f32.mrb[8].mxu1  ;;  %634 = vmatprep.subr.bf16.mxu0 %v355_v10  ;;  %664 = vmatprep.subr.bf16.mxu1 %v355_v10 }
 0x203   :  { %v315_v7 = vadd.f32 %v624_v54, %v922_v60  ;;  %v306_v57 = vpop.f32.mrb[9].mxu1  ;;  %635 = vmatpush3.bf16.msra.mxu0 %v355_v10  ;;  %672 = vmatpush3.bf16.msra.mxu1 %v355_v10 }
 0x204   :  { %v307_v15 = vadd.f32 %v306_v57, %v932_v3  ;;  %v625_v0 = vpop.f32.mrb[10].mxu1  ;;  %636 = vmatprep.subr.bf16.mxu0 %v356_v58  ;;  %665 = vmatprep.subr.bf16.mxu1 %v356_v58 }
 0x205   :  { %v1047_v4 = vadd.f32 %v315_v7, %v226_v28  ;;  %v318_v16 = vadd.f32 %v625_v0, %v927_v62  ;;  %v309_v11 = vpop.f32.mrb[11].mxu1 }
 0x206   :  { %v1052_v24 = vadd.f32 %v307_v15, %v224_v2  ;;  %v310_v13 = vadd.f32 %v309_v11, %v937_v5 }
 0x207   :  { %v1055_v18 = vadd.f32 %v318_v16, %v227_v38  ;;  %v358_v1 = vpack.c.bf16 %v318_v16, %v315_v7  ;;  %637 = vmatpush3.bf16.msra.mxu0 %v356_v58  ;;  %673 = vmatpush3.bf16.msra.mxu1 %v356_v58  ;;  %v229_v58 = vadd.f32 %v985_v61, %v789_v20  ;;  %v1175_v20 = vld [vmem:[#allocation2_spill] sm:$0xff]  ;;  %v1176_v7 = vld [vmem:[#allocation3_spill] sm:$0xff]  ;;  %v1177_v38 = vld [vmem:[#allocation4_spill] sm:$0xff] }
 0x208   :  { %v1057_v31 = vadd.f32 %v310_v13, %v225_v40  ;;  %v357_v17 = vpack.c.bf16 %v310_v13, %v307_v15 }
 0x20a   :  { %v628_v12 = vpop.f32.mrb[12].mxu1  ;;  %638 = vmatprep.subr.bf16.mxu0 %v357_v17  ;;  %666 = vmatprep.subr.bf16.mxu1 %v357_v17 }
 0x20b   :  { %v331_v14 = vadd.f32 %v628_v12, %v958_v35  ;;  %v322_v21 = vpop.f32.mrb[13].mxu1  ;;  %639 = vmatpush3.bf16.msra.mxu0 %v357_v17  ;;  %674 = vmatpush3.bf16.msra.mxu1 %v357_v17 }
 0x20c   :  { %v323_v8 = vadd.f32 %v322_v21, %v968_v45  ;;  %v629_v53 = vpop.f32.mrb[14].mxu1  ;;  %640 = vmatprep.subr.bf16.mxu0 %v358_v1  ;;  %667 = vmatprep.subr.bf16.mxu1 %v358_v1 }
 0x20d   :  { %v1067_v6 = vadd.f32 %v331_v14, %v230_v43  ;;  %v334_v22 = vadd.f32 %v629_v53, %v963_v41  ;;  %v325_v52 = vpop.f32.mrb[15].mxu1 }
 0x20e   :  { %v1072_v10 = vadd.f32 %v323_v8, %v228_v33  ;;  %v326_v19 = vadd.f32 %v325_v52, %v973_v47 }
 0x20f   :  { %v1075_v59 = vadd.f32 %v334_v22, %v231_v36  ;;  %v360_v54 = vpack.c.bf16 %v334_v22, %v331_v14  ;;  %641 = vmatpush3.bf16.msra.mxu0 %v358_v1  ;;  %675 = vmatpush3.bf16.msra.mxu1 %v358_v1 }
 0x210   :  { %v1077_v28 = vadd.f32 %v326_v19, %v229_v58  ;;  %v359_v23 = vpack.c.bf16 %v326_v19, %v323_v8 }
 0x212   :  { %642 = vmatprep.subr.bf16.mxu0 %v359_v23  ;;  %668 = vmatprep.subr.bf16.mxu1 %v359_v23 }
 0x213   :  { %643 = vmatpush3.bf16.msra.mxu0 %v359_v23  ;;  %676 = vmatpush3.bf16.msra.mxu1 %v359_v23 }
 0x214   :  { %644 = vmatprep.subr.bf16.mxu0 %v360_v54  ;;  %669 = vmatprep.subr.bf16.mxu1 %v360_v54 }
 0x217   :  { %645 = vmatpush3.bf16.msra.mxu0 %v360_v54  ;;  %677 = vmatpush3.bf16.msra.mxu1 %v360_v54 }
 0x21a   :  { %647 = vmatmul.mubr.bf16.vlgmr.msra.gmra.mrb[16].mxu0 %v808_v25  ;;  %655 = vmatmul.mubr.bf16.vlgmr.msra.gmra.mrb[16].mxu1 %v832_v29 }
 0x21b   :  { %650 = vmatprep.mubr.bf16.mxu0 %v813_v26  ;;  %658 = vmatprep.mubr.bf16.mxu1 %v837_v30 }
 0x222   :  { %651 = vmatmul.mubr.bf16.gmra.mrb[20].mxu0 %v820_v27  ;;  %659 = vmatmul.mubr.bf16.gmra.mrb[20].mxu1 %v1175_v20 }
 0x2ed   :  { %v648_v55 = vpop.f32.mrb[16].mxu0  ;;  %v656_v61 = vpop.f32.mrb[16].mxu1 }
 0x2ee   :  { %v404_v57 = vadd.f32 %v648_v55, %v1176_v7  ;;  %v436_v2 = vadd.f32 %v656_v61, %v922_v60  ;;  %v395_v15 = vpop.f32.mrb[17].mxu0  ;;  %v427_v0 = vpop.f32.mrb[17].mxu1 }
 0x2ef   :  { %v396_v25 = vadd.f32 %v395_v15, %v1177_v38  ;;  %v428_v29 = vadd.f32 %v427_v0, %v932_v3  ;;  %v649_v16 = vpop.f32.mrb[18].mxu0  ;;  %v657_v26 = vpop.f32.mrb[18].mxu1 }
 0x2f0   :  { %v460_v30 = vadd.f32 %v404_v57, %v1007_v9  ;;  %v468_v27 = vadd.f32 %v436_v2, %v1047_v4  ;;  %v407_v11 = vadd.f32 %v649_v16, %v855_v34  ;;  %v439_v40 = vadd.f32 %v657_v26, %v927_v62  ;;  %v398_v13 = vpop.f32.mrb[19].mxu0  ;;  %v430_v1 = vpop.f32.mrb[19].mxu1 }
 0x2f1   :  { %v458_v60 = vadd.f32 %v396_v25, %v1012_v39  ;;  %v466_v17 = vadd.f32 %v428_v29, %v1052_v24  ;;  %v399_v12 = vadd.f32 %v398_v13, %v865_v37  ;;  %v431_v3 = vadd.f32 %v430_v1, %v937_v5 }
 0x2f2   :  { %v476_v43 = vmul.f32 0.25, %v460_v30  ;;  %v484_v14 = vmul.f32 0.25, %v468_v27  ;;  %v461_v9 = vadd.f32 %v407_v11, %v1015_v32  ;;  %v469_v4 = vadd.f32 %v439_v40, %v1055_v18 }
 0x2f3   :  { %v474_v21 = vmul.f32 0.25, %v458_v60  ;;  %v482_v34 = vmul.f32 0.25, %v466_v17  ;;  %v459_v62 = vadd.f32 %v399_v12, %v1017_v42  ;;  %v467_v33 = vadd.f32 %v431_v3, %v1057_v31 }
 0x2f4   :  { %492 = vst [vmem:[%s1168_s3 + $0x10] sm:$0xff] %v476_v43  ;;  %500 = vst [vmem:[%s1168_s3 + $0x50] sm:$0xff] %v484_v14  ;;  %v477_v37 = vmul.f32 0.25, %v461_v9  ;;  %v485_v5 = vmul.f32 0.25, %v469_v4 }
 0x2f5   :  { %490 = vst [vmem:[%s1168_s3] sm:$0xff] %v474_v21  ;;  %498 = vst [vmem:[%s1168_s3 + $0x40] sm:$0xff] %v482_v34  ;;  %v475_v32 = vmul.f32 0.25, %v459_v62  ;;  %v483_v39 = vmul.f32 0.25, %v467_v33  ;;  %v652_v42 = vpop.f32.mrb[20].mxu0  ;;  %v660_v24 = vpop.f32.mrb[20].mxu1 }
 0x2f6   :  { %493 = vst [vmem:[%s1168_s3 + $0x18] sm:$0xff] %v477_v37  ;;  %501 = vst [vmem:[%s1168_s3 + $0x58] sm:$0xff] %v485_v5  ;;  %v420_v18 = vadd.f32 %v652_v42, %v886_v46  ;;  %v452_v31 = vadd.f32 %v660_v24, %v958_v35  ;;  %v411_v8 = vpop.f32.mrb[21].mxu0  ;;  %v443_v53 = vpop.f32.mrb[21].mxu1 }
 0x2f7   :  { %491 = vst [vmem:[%s1168_s3 + $0x8] sm:$0xff] %v475_v32  ;;  %499 = vst [vmem:[%s1168_s3 + $0x48] sm:$0xff] %v483_v39  ;;  %v412_v36 = vadd.f32 %v411_v8, %v896_v50  ;;  %v444_v22 = vadd.f32 %v443_v53, %v968_v45  ;;  %v653_v52 = vpop.f32.mrb[22].mxu0  ;;  %v661_v58 = vpop.f32.mrb[22].mxu1 }
 0x2f8   :  { %v464_v46 = vadd.f32 %v420_v18, %v1027_v44  ;;  %v472_v35 = vadd.f32 %v452_v31, %v1067_v6  ;;  %v423_v19 = vadd.f32 %v653_v52, %v891_v48  ;;  %v455_v54 = vadd.f32 %v661_v58, %v963_v41  ;;  %v414_v23 = vpop.f32.mrb[23].mxu0  ;;  %v446_v20 = vpop.f32.mrb[23].mxu1 }
 0x2f9   :  { %v462_v55 = vadd.f32 %v412_v36, %v1032_v49  ;;  %v470_v61 = vadd.f32 %v444_v22, %v1072_v10  ;;  %v415_v50 = vadd.f32 %v414_v23, %v901_v51  ;;  %v447_v45 = vadd.f32 %v446_v20, %v973_v47 }
 0x2fa   :  { %v480_v7 = vmul.f32 0.25, %v464_v46  ;;  %v488_v57 = vmul.f32 0.25, %v472_v35  ;;  %v465_v44 = vadd.f32 %v423_v19, %v1035_v56  ;;  %v473_v6 = vadd.f32 %v455_v54, %v1075_v59 }
 0x2fb   :  { %v478_v2 = vmul.f32 0.25, %v462_v55  ;;  %v486_v48 = vmul.f32 0.25, %v470_v61  ;;  %v463_v41 = vadd.f32 %v415_v50, %v1037_v63  ;;  %v471_v15 = vadd.f32 %v447_v45, %v1077_v28 }
 0x2fc   :  { %496 = vst [vmem:[%s1168_s3 + $0x30] sm:$0xff] %v480_v7  ;;  %504 = vst [vmem:[%s1168_s3 + $0x70] sm:$0xff] %v488_v57  ;;  %v481_v51 = vmul.f32 0.25, %v465_v44  ;;  %v489_v47 = vmul.f32 0.25, %v473_v6 }
 0x2fd   :  { %494 = vst [vmem:[%s1168_s3 + $0x20] sm:$0xff] %v478_v2  ;;  %502 = vst [vmem:[%s1168_s3 + $0x60] sm:$0xff] %v486_v48  ;;  %v479_v49 = vmul.f32 0.25, %v463_v41  ;;  %v487_v56 = vmul.f32 0.25, %v471_v15 }
 0x2fe   :  { %497 = vst [vmem:[%s1168_s3 + $0x38] sm:$0xff] %v481_v51  ;;  %505 = vst [vmem:[%s1168_s3 + $0x78] sm:$0xff] %v489_v47 }
 0x2ff   :  { %495 = vst [vmem:[%s1168_s3 + $0x28] sm:$0xff] %v479_v49  ;;  %503 = vst [vmem:[%s1168_s3 + $0x68] sm:$0xff] %v487_v56 }

</bundles_post_ra>
